<compile_context>
chip_gen: v7x
topology: tpu7x:2x2x1
jax: 0.10.0
libtpu: 0.0.40
codegen_flags: <defaults>
</compile_context>

<pallas_src>
import jax
import jax.numpy as jnp
import numpy as np
from jax.experimental import pallas as pl
from jax.experimental.pallas import tpu as pltpu


def _round_up(x, m):
    return ((x + m - 1) // m) * m


def position_encoder_kernel(x_ref, w1_ref, b1_ref, w2_ref, b2_ref,
                            out_ref, both_ref):
    """Fused MLP + src/tgt sum + common-nodes indicator, lane-dense layout.

    x_ref   : [L+1, 2, T]  VMEM tile (T lanes; row g=0 src, g=1 tgt, feature k)
    w1_ref  : [L+1, D]     SMEM (scalar reads)
    b1_ref  : [D]          SMEM
    w2_ref  : [D, D]       SMEM
    b2_ref  : [D]          SMEM
    out_ref : [D, T]       VMEM tile  (out[d, n] = MLP output, summed over src/tgt)
    both_ref: [1, T]       VMEM tile  (1.0 where both src and tgt rows are nonzero)
    """
    Lp1 = x_ref.shape[0]
    D = out_ref.shape[0]

    # Load the k-th feature slab for (src, tgt) together: [2, T], zero shuffles.
    xk = [x_ref[k] for k in range(Lp1)]

    # ---- layer 1 (unrolled VPU MACs, weights splatted from SMEM scalars) ----
    # g[j] = ReLU(x_src . w1[:, j] + b1[j]) + ReLU(x_tgt . w1[:, j] + b1[j])
    g = []
    for j in range(D):
        acc = xk[0] * w1_ref[0, j]
        for k in range(1, Lp1):
            acc = acc + xk[k] * w1_ref[k, j]
        h = jnp.maximum(acc + b1_ref[j], 0.0)          # [2, T]
        g.append(h[0:1, :] + h[1:2, :])                # [1, T]  (src + tgt)

    # ---- layer 2 (src/tgt sum already folded: + 2*b2) ----
    rows = []
    for d in range(D):
        acc = g[0] * w2_ref[0, d]
        for j in range(1, D):
            acc = acc + g[j] * w2_ref[j, d]
        rows.append(acc + 2.0 * b2_ref[d])             # [1, T]
    out_ref[...] = jnp.concatenate(rows, axis=0)       # [D, T], lane-dense store

    # ---- common-nodes indicator: both src-row-sum > 0 and tgt-row-sum > 0 ----
    s = xk[0]
    for k in range(1, Lp1):
        s = s + xk[k]                                  # [2, T]
    both = jnp.logical_and(s[0:1, :] > 0.0, s[1:2, :] > 0.0)
    both_ref[...] = both.astype(jnp.float32)           # [1, T]


def position_encoder_forward(encodings, w1, b1, w2, b2, tile_n=2048):
    """encodings: [B, S, 2, L+1] f32 -> (out [B, S, D], common_nodes scalar)."""
    B, S, two, Lp1 = encodings.shape
    assert two == 2
    D = w1.shape[1]
    N = B * S

    # Lane-dense layout: N on lanes, tiny feature dims on sublanes / leading dim.
    # [B, S, 2, L+1] -> [L+1, 2, N]   (layout plumbing in the wrapper)
    x = jnp.transpose(encodings.reshape(N, 2, Lp1), (2, 1, 0)).astype(jnp.float32)

    # Lane tiling: 128-aligned tiles, up to `tile_n` columns per grid step.
    tile = min(tile_n, _round_up(N, 128))
    n_pad = _round_up(N, tile)
    if n_pad != N:
        x = jnp.pad(x, ((0, 0), (0, 0), (0, n_pad - N)))   # zero cols -> indicator 0
    grid = (n_pad // tile,)

    flops = 2 * N * 2 * (Lp1 * D + D * D)                  # MACs of both layers
    bytes_accessed = (x.size + (D + 1) * n_pad
                      + w1.size + w2.size + 2 * D) * 4

    out_t, both = pl.pallas_call(
        position_encoder_kernel,
        out_shape=(
            jax.ShapeDtypeStruct((D, n_pad), jnp.float32),
            jax.ShapeDtypeStruct((1, n_pad), jnp.float32),
        ),
        grid=grid,
        in_specs=[
            pl.BlockSpec((Lp1, 2, tile), lambda i: (0, 0, i)),
            pl.BlockSpec(memory_space=pltpu.MemorySpace.SMEM),   # w1
            pl.BlockSpec(memory_space=pltpu.MemorySpace.SMEM),   # b1
            pl.BlockSpec(memory_space=pltpu.MemorySpace.SMEM),   # w2
            pl.BlockSpec(memory_space=pltpu.MemorySpace.SMEM),   # b2
        ],
        out_specs=(
            pl.BlockSpec((D, tile), lambda i: (0, i)),
            pl.BlockSpec((1, tile), lambda i: (0, i)),
        ),
        compiler_params=pltpu.CompilerParams(
            dimension_semantics=("parallel",)),
        cost_estimate=pl.CostEstimate(
            flops=flops, transcendentals=0, bytes_accessed=bytes_accessed),
    )(x, w1, b1, w2, b2)

    out = jnp.transpose(out_t[:, :N], (1, 0)).reshape(B, S, D)
    common = jnp.sum(both[0, :N]) * (1.0 / float(N))   # precomputed 1/(B*S)
    return out, common


def reference_forward(encodings, w1, b1, w2, b2):
    """Pure-JAX reference mirroring the PyTorch forward ('lp' branch)."""
    h = jnp.maximum(encodings @ w1 + b1, 0.0)
    y = h @ w2 + b2                                   # [B, S, 2, D]
    out = y.sum(axis=-2)                              # [B, S, D]
    common = jnp.mean(((encodings.sum(-1) > 0).sum(-1) == 2).astype(jnp.float32))
    return out, common


if __name__ == "__main__":
    # --- shapes implied by the module -----------------------------------
    batch, support_n = 4, 8        # [batch, k-hop-support-number]
    num_layers = 2                 # -> L+1 = 3 input features of the MLP
    enc_dim = 4
    num_nodes = 10
    Lp1 = num_layers + 1

    key = jax.random.PRNGKey(0)
    k_node, k_t, k_tab, k_w1, k_b1, k_w2, k_b2 = jax.random.split(key, 7)

    # forward() inputs (numpy arrays in the original module)
    node_record = jax.random.randint(k_node, (batch, support_n), 0, num_nodes)
    t_record = jax.random.uniform(k_t, (batch, support_n), dtype=jnp.float32)

    # Emulate nodetime2emb_maps lookup: a deterministic per-node table of
    # (2, L+1) landing-probability rows; node id 0 is the "null key" -> zeros.
    # TODO(synk): real module builds this via a CPU hash-map over temporal
    # subgraphs; reproduced here as a table gather (host/JAX glue, not kernel).
    table = jax.random.uniform(k_tab, (num_nodes, 2, Lp1), dtype=jnp.float32)
    table = table.at[0].set(0.0)
    encodings = table[node_record]                     # [B, S, 2, L+1]

    # trainable_embedding = Linear(L+1 -> enc_dim), ReLU, Linear(enc_dim -> enc_dim)
    bound1 = 1.0 / np.sqrt(Lp1)
    bound2 = 1.0 / np.sqrt(enc_dim)
    w1 = jax.random.uniform(k_w1, (Lp1, enc_dim), minval=-bound1, maxval=bound1,
                            dtype=jnp.float32)
    b1 = jax.random.uniform(k_b1, (enc_dim,), minval=-bound1, maxval=bound1,
                            dtype=jnp.float32)
    w2 = jax.random.uniform(k_w2, (enc_dim, enc_dim), minval=-bound2, maxval=bound2,
                            dtype=jnp.float32)
    b2 = jax.random.uniform(k_b2, (enc_dim,), minval=-bound2, maxval=bound2,
                            dtype=jnp.float32)

    out, common_nodes = position_encoder_forward(encodings, w1, b1, w2, b2)
    out = jax.block_until_ready(out)
    common_nodes = jax.block_until_ready(common_nodes)

    # correctness check against pure-JAX reference
    ref_out, ref_common = reference_forward(encodings, w1, b1, w2, b2)
    np.testing.assert_allclose(np.asarray(out), np.asarray(ref_out),
                               rtol=1e-5, atol=1e-5)
    np.testing.assert_allclose(float(common_nodes), float(ref_common),
                               rtol=1e-6, atol=1e-6)

    print("KERNEL_OK")
</pallas_src>

<mosaic_0001>
module attributes {stable_mosaic.version = 11 : i64} {
  func.func @position_encoder_kernel(%arg0: i32, %arg1: memref<3x2x128xf32, #tpu.memory_space<vmem>>, %arg2: memref<3x4xf32, #tpu.memory_space<smem>>, %arg3: memref<4xf32, #tpu.memory_space<smem>>, %arg4: memref<4x4xf32, #tpu.memory_space<smem>>, %arg5: memref<4xf32, #tpu.memory_space<smem>>, %arg6: memref<4x128xf32, #tpu.memory_space<vmem>>, %arg7: memref<1x128xf32, #tpu.memory_space<vmem>>) attributes {dimension_semantics = [#tpu.dimension_semantics<parallel>], iteration_bounds = array<i64: 1>, scalar_prefetch = 0 : i64, scratch_operands = 0 : i64, tpu.core_type = #tpu.core_type<tc>, window_params = [{transform_indices = @transform_0, window_bounds = array<i64: 3, 2, 128>}, {transform_indices = @transform_1, window_bounds = array<i64: 3, 4>}, {transform_indices = @transform_2, window_bounds = array<i64: 4>}, {transform_indices = @transform_3, window_bounds = array<i64: 4, 4>}, {transform_indices = @transform_4, window_bounds = array<i64: 4>}, {transform_indices = @transform_5, window_bounds = array<i64: 4, 128>}, {transform_indices = @transform_6, window_bounds = array<i64: 1, 128>}]} {
    %c0 = arith.constant 0 : index
    %c0_0 = arith.constant 0 : index
    %c0_1 = arith.constant 0 : index
    %0 = vector.load %arg1[%c0, %c0_0, %c0_1] : memref<3x2x128xf32, #tpu.memory_space<vmem>>, vector<1x2x128xf32>
    %1 = vector.shape_cast %0 : vector<1x2x128xf32> to vector<2x128xf32>
    %c1 = arith.constant 1 : index
    %c0_2 = arith.constant 0 : index
    %c0_3 = arith.constant 0 : index
    %2 = vector.load %arg1[%c1, %c0_2, %c0_3] : memref<3x2x128xf32, #tpu.memory_space<vmem>>, vector<1x2x128xf32>
    %3 = vector.shape_cast %2 : vector<1x2x128xf32> to vector<2x128xf32>
    %c2 = arith.constant 2 : index
    %c0_4 = arith.constant 0 : index
    %c0_5 = arith.constant 0 : index
    %4 = vector.load %arg1[%c2, %c0_4, %c0_5] : memref<3x2x128xf32, #tpu.memory_space<vmem>>, vector<1x2x128xf32>
    %5 = vector.shape_cast %4 : vector<1x2x128xf32> to vector<2x128xf32>
    %c0_6 = arith.constant 0 : index
    %c0_7 = arith.constant 0 : index
    %6 = memref.load %arg2[%c0_6, %c0_7] : memref<3x4xf32, #tpu.memory_space<smem>>
    %7 = vector.broadcast %6 : f32 to vector<2x128xf32>
    %8 = arith.mulf %1, %7 : vector<2x128xf32>
    %c1_8 = arith.constant 1 : index
    %c0_9 = arith.constant 0 : index
    %9 = memref.load %arg2[%c1_8, %c0_9] : memref<3x4xf32, #tpu.memory_space<smem>>
    %10 = vector.broadcast %9 : f32 to vector<2x128xf32>
    %11 = arith.mulf %3, %10 : vector<2x128xf32>
    %12 = arith.addf %8, %11 : vector<2x128xf32>
    %c2_10 = arith.constant 2 : index
    %c0_11 = arith.constant 0 : index
    %13 = memref.load %arg2[%c2_10, %c0_11] : memref<3x4xf32, #tpu.memory_space<smem>>
    %14 = vector.broadcast %13 : f32 to vector<2x128xf32>
    %15 = arith.mulf %5, %14 : vector<2x128xf32>
    %16 = arith.addf %12, %15 : vector<2x128xf32>
    %c0_12 = arith.constant 0 : index
    %17 = memref.load %arg3[%c0_12] : memref<4xf32, #tpu.memory_space<smem>>
    %18 = vector.broadcast %17 : f32 to vector<2x128xf32>
    %19 = arith.addf %16, %18 : vector<2x128xf32>
    %cst = arith.constant 0.000000e+00 : f32
    %20 = vector.broadcast %cst : f32 to vector<2x128xf32>
    %21 = arith.maximumf %19, %20 : vector<2x128xf32>
    %22 = vector.extract_strided_slice %21 {offsets = [0, 0], sizes = [1, 128], strides = [1, 1]} : vector<2x128xf32> to vector<1x128xf32>
    %23 = vector.extract_strided_slice %21 {offsets = [1, 0], sizes = [1, 128], strides = [1, 1]} : vector<2x128xf32> to vector<1x128xf32>
    %24 = arith.addf %22, %23 : vector<1x128xf32>
    %c0_13 = arith.constant 0 : index
    %c1_14 = arith.constant 1 : index
    %25 = memref.load %arg2[%c0_13, %c1_14] : memref<3x4xf32, #tpu.memory_space<smem>>
    %26 = vector.broadcast %25 : f32 to vector<2x128xf32>
    %27 = arith.mulf %1, %26 : vector<2x128xf32>
    %c1_15 = arith.constant 1 : index
    %c1_16 = arith.constant 1 : index
    %28 = memref.load %arg2[%c1_15, %c1_16] : memref<3x4xf32, #tpu.memory_space<smem>>
    %29 = vector.broadcast %28 : f32 to vector<2x128xf32>
    %30 = arith.mulf %3, %29 : vector<2x128xf32>
    %31 = arith.addf %27, %30 : vector<2x128xf32>
    %c2_17 = arith.constant 2 : index
    %c1_18 = arith.constant 1 : index
    %32 = memref.load %arg2[%c2_17, %c1_18] : memref<3x4xf32, #tpu.memory_space<smem>>
    %33 = vector.broadcast %32 : f32 to vector<2x128xf32>
    %34 = arith.mulf %5, %33 : vector<2x128xf32>
    %35 = arith.addf %31, %34 : vector<2x128xf32>
    %c1_19 = arith.constant 1 : index
    %36 = memref.load %arg3[%c1_19] : memref<4xf32, #tpu.memory_space<smem>>
    %37 = vector.broadcast %36 : f32 to vector<2x128xf32>
    %38 = arith.addf %35, %37 : vector<2x128xf32>
    %cst_20 = arith.constant 0.000000e+00 : f32
    %39 = vector.broadcast %cst_20 : f32 to vector<2x128xf32>
    %40 = arith.maximumf %38, %39 : vector<2x128xf32>
    %41 = vector.extract_strided_slice %40 {offsets = [0, 0], sizes = [1, 128], strides = [1, 1]} : vector<2x128xf32> to vector<1x128xf32>
    %42 = vector.extract_strided_slice %40 {offsets = [1, 0], sizes = [1, 128], strides = [1, 1]} : vector<2x128xf32> to vector<1x128xf32>
    %43 = arith.addf %41, %42 : vector<1x128xf32>
    %c0_21 = arith.constant 0 : index
    %c2_22 = arith.constant 2 : index
    %44 = memref.load %arg2[%c0_21, %c2_22] : memref<3x4xf32, #tpu.memory_space<smem>>
    %45 = vector.broadcast %44 : f32 to vector<2x128xf32>
    %46 = arith.mulf %1, %45 : vector<2x128xf32>
    %c1_23 = arith.constant 1 : index
    %c2_24 = arith.constant 2 : index
    %47 = memref.load %arg2[%c1_23, %c2_24] : memref<3x4xf32, #tpu.memory_space<smem>>
    %48 = vector.broadcast %47 : f32 to vector<2x128xf32>
    %49 = arith.mulf %3, %48 : vector<2x128xf32>
    %50 = arith.addf %46, %49 : vector<2x128xf32>
    %c2_25 = arith.constant 2 : index
    %c2_26 = arith.constant 2 : index
    %51 = memref.load %arg2[%c2_25, %c2_26] : memref<3x4xf32, #tpu.memory_space<smem>>
    %52 = vector.broadcast %51 : f32 to vector<2x128xf32>
    %53 = arith.mulf %5, %52 : vector<2x128xf32>
    %54 = arith.addf %50, %53 : vector<2x128xf32>
    %c2_27 = arith.constant 2 : index
    %55 = memref.load %arg3[%c2_27] : memref<4xf32, #tpu.memory_space<smem>>
    %56 = vector.broadcast %55 : f32 to vector<2x128xf32>
    %57 = arith.addf %54, %56 : vector<2x128xf32>
    %cst_28 = arith.constant 0.000000e+00 : f32
    %58 = vector.broadcast %cst_28 : f32 to vector<2x128xf32>
    %59 = arith.maximumf %57, %58 : vector<2x128xf32>
    %60 = vector.extract_strided_slice %59 {offsets = [0, 0], sizes = [1, 128], strides = [1, 1]} : vector<2x128xf32> to vector<1x128xf32>
    %61 = vector.extract_strided_slice %59 {offsets = [1, 0], sizes = [1, 128], strides = [1, 1]} : vector<2x128xf32> to vector<1x128xf32>
    %62 = arith.addf %60, %61 : vector<1x128xf32>
    %c0_29 = arith.constant 0 : index
    %c3 = arith.constant 3 : index
    %63 = memref.load %arg2[%c0_29, %c3] : memref<3x4xf32, #tpu.memory_space<smem>>
    %64 = vector.broadcast %63 : f32 to vector<2x128xf32>
    %65 = arith.mulf %1, %64 : vector<2x128xf32>
    %c1_30 = arith.constant 1 : index
    %c3_31 = arith.constant 3 : index
    %66 = memref.load %arg2[%c1_30, %c3_31] : memref<3x4xf32, #tpu.memory_space<smem>>
    %67 = vector.broadcast %66 : f32 to vector<2x128xf32>
    %68 = arith.mulf %3, %67 : vector<2x128xf32>
    %69 = arith.addf %65, %68 : vector<2x128xf32>
    %c2_32 = arith.constant 2 : index
    %c3_33 = arith.constant 3 : index
    %70 = memref.load %arg2[%c2_32, %c3_33] : memref<3x4xf32, #tpu.memory_space<smem>>
    %71 = vector.broadcast %70 : f32 to vector<2x128xf32>
    %72 = arith.mulf %5, %71 : vector<2x128xf32>
    %73 = arith.addf %69, %72 : vector<2x128xf32>
    %c3_34 = arith.constant 3 : index
    %74 = memref.load %arg3[%c3_34] : memref<4xf32, #tpu.memory_space<smem>>
    %75 = vector.broadcast %74 : f32 to vector<2x128xf32>
    %76 = arith.addf %73, %75 : vector<2x128xf32>
    %cst_35 = arith.constant 0.000000e+00 : f32
    %77 = vector.broadcast %cst_35 : f32 to vector<2x128xf32>
    %78 = arith.maximumf %76, %77 : vector<2x128xf32>
    %79 = vector.extract_strided_slice %78 {offsets = [0, 0], sizes = [1, 128], strides = [1, 1]} : vector<2x128xf32> to vector<1x128xf32>
    %80 = vector.extract_strided_slice %78 {offsets = [1, 0], sizes = [1, 128], strides = [1, 1]} : vector<2x128xf32> to vector<1x128xf32>
    %81 = arith.addf %79, %80 : vector<1x128xf32>
    %c0_36 = arith.constant 0 : index
    %c0_37 = arith.constant 0 : index
    %82 = memref.load %arg4[%c0_36, %c0_37] : memref<4x4xf32, #tpu.memory_space<smem>>
    %83 = vector.broadcast %82 : f32 to vector<1x128xf32>
    %84 = arith.mulf %24, %83 : vector<1x128xf32>
    %c1_38 = arith.constant 1 : index
    %c0_39 = arith.constant 0 : index
    %85 = memref.load %arg4[%c1_38, %c0_39] : memref<4x4xf32, #tpu.memory_space<smem>>
    %86 = vector.broadcast %85 : f32 to vector<1x128xf32>
    %87 = arith.mulf %43, %86 : vector<1x128xf32>
    %88 = arith.addf %84, %87 : vector<1x128xf32>
    %c2_40 = arith.constant 2 : index
    %c0_41 = arith.constant 0 : index
    %89 = memref.load %arg4[%c2_40, %c0_41] : memref<4x4xf32, #tpu.memory_space<smem>>
    %90 = vector.broadcast %89 : f32 to vector<1x128xf32>
    %91 = arith.mulf %62, %90 : vector<1x128xf32>
    %92 = arith.addf %88, %91 : vector<1x128xf32>
    %c3_42 = arith.constant 3 : index
    %c0_43 = arith.constant 0 : index
    %93 = memref.load %arg4[%c3_42, %c0_43] : memref<4x4xf32, #tpu.memory_space<smem>>
    %94 = vector.broadcast %93 : f32 to vector<1x128xf32>
    %95 = arith.mulf %81, %94 : vector<1x128xf32>
    %96 = arith.addf %92, %95 : vector<1x128xf32>
    %c0_44 = arith.constant 0 : index
    %97 = memref.load %arg5[%c0_44] : memref<4xf32, #tpu.memory_space<smem>>
    %cst_45 = arith.constant 2.000000e+00 : f32
    %98 = arith.mulf %cst_45, %97 : f32
    %99 = vector.broadcast %98 : f32 to vector<1x128xf32>
    %100 = arith.addf %96, %99 : vector<1x128xf32>
    %c0_46 = arith.constant 0 : index
    %c1_47 = arith.constant 1 : index
    %101 = memref.load %arg4[%c0_46, %c1_47] : memref<4x4xf32, #tpu.memory_space<smem>>
    %102 = vector.broadcast %101 : f32 to vector<1x128xf32>
    %103 = arith.mulf %24, %102 : vector<1x128xf32>
    %c1_48 = arith.constant 1 : index
    %c1_49 = arith.constant 1 : index
    %104 = memref.load %arg4[%c1_48, %c1_49] : memref<4x4xf32, #tpu.memory_space<smem>>
    %105 = vector.broadcast %104 : f32 to vector<1x128xf32>
    %106 = arith.mulf %43, %105 : vector<1x128xf32>
    %107 = arith.addf %103, %106 : vector<1x128xf32>
    %c2_50 = arith.constant 2 : index
    %c1_51 = arith.constant 1 : index
    %108 = memref.load %arg4[%c2_50, %c1_51] : memref<4x4xf32, #tpu.memory_space<smem>>
    %109 = vector.broadcast %108 : f32 to vector<1x128xf32>
    %110 = arith.mulf %62, %109 : vector<1x128xf32>
    %111 = arith.addf %107, %110 : vector<1x128xf32>
    %c3_52 = arith.constant 3 : index
    %c1_53 = arith.constant 1 : index
    %112 = memref.load %arg4[%c3_52, %c1_53] : memref<4x4xf32, #tpu.memory_space<smem>>
    %113 = vector.broadcast %112 : f32 to vector<1x128xf32>
    %114 = arith.mulf %81, %113 : vector<1x128xf32>
    %115 = arith.addf %111, %114 : vector<1x128xf32>
    %c1_54 = arith.constant 1 : index
    %116 = memref.load %arg5[%c1_54] : memref<4xf32, #tpu.memory_space<smem>>
    %cst_55 = arith.constant 2.000000e+00 : f32
    %117 = arith.mulf %cst_55, %116 : f32
    %118 = vector.broadcast %117 : f32 to vector<1x128xf32>
    %119 = arith.addf %115, %118 : vector<1x128xf32>
    %c0_56 = arith.constant 0 : index
    %c2_57 = arith.constant 2 : index
    %120 = memref.load %arg4[%c0_56, %c2_57] : memref<4x4xf32, #tpu.memory_space<smem>>
    %121 = vector.broadcast %120 : f32 to vector<1x128xf32>
    %122 = arith.mulf %24, %121 : vector<1x128xf32>
    %c1_58 = arith.constant 1 : index
    %c2_59 = arith.constant 2 : index
    %123 = memref.load %arg4[%c1_58, %c2_59] : memref<4x4xf32, #tpu.memory_space<smem>>
    %124 = vector.broadcast %123 : f32 to vector<1x128xf32>
    %125 = arith.mulf %43, %124 : vector<1x128xf32>
    %126 = arith.addf %122, %125 : vector<1x128xf32>
    %c2_60 = arith.constant 2 : index
    %c2_61 = arith.constant 2 : index
    %127 = memref.load %arg4[%c2_60, %c2_61] : memref<4x4xf32, #tpu.memory_space<smem>>
    %128 = vector.broadcast %127 : f32 to vector<1x128xf32>
    %129 = arith.mulf %62, %128 : vector<1x128xf32>
    %130 = arith.addf %126, %129 : vector<1x128xf32>
    %c3_62 = arith.constant 3 : index
    %c2_63 = arith.constant 2 : index
    %131 = memref.load %arg4[%c3_62, %c2_63] : memref<4x4xf32, #tpu.memory_space<smem>>
    %132 = vector.broadcast %131 : f32 to vector<1x128xf32>
    %133 = arith.mulf %81, %132 : vector<1x128xf32>
    %134 = arith.addf %130, %133 : vector<1x128xf32>
    %c2_64 = arith.constant 2 : index
    %135 = memref.load %arg5[%c2_64] : memref<4xf32, #tpu.memory_space<smem>>
    %cst_65 = arith.constant 2.000000e+00 : f32
    %136 = arith.mulf %cst_65, %135 : f32
    %137 = vector.broadcast %136 : f32 to vector<1x128xf32>
    %138 = arith.addf %134, %137 : vector<1x128xf32>
    %c0_66 = arith.constant 0 : index
    %c3_67 = arith.constant 3 : index
    %139 = memref.load %arg4[%c0_66, %c3_67] : memref<4x4xf32, #tpu.memory_space<smem>>
    %140 = vector.broadcast %139 : f32 to vector<1x128xf32>
    %141 = arith.mulf %24, %140 : vector<1x128xf32>
    %c1_68 = arith.constant 1 : index
    %c3_69 = arith.constant 3 : index
    %142 = memref.load %arg4[%c1_68, %c3_69] : memref<4x4xf32, #tpu.memory_space<smem>>
    %143 = vector.broadcast %142 : f32 to vector<1x128xf32>
    %144 = arith.mulf %43, %143 : vector<1x128xf32>
    %145 = arith.addf %141, %144 : vector<1x128xf32>
    %c2_70 = arith.constant 2 : index
    %c3_71 = arith.constant 3 : index
    %146 = memref.load %arg4[%c2_70, %c3_71] : memref<4x4xf32, #tpu.memory_space<smem>>
    %147 = vector.broadcast %146 : f32 to vector<1x128xf32>
    %148 = arith.mulf %62, %147 : vector<1x128xf32>
    %149 = arith.addf %145, %148 : vector<1x128xf32>
    %c3_72 = arith.constant 3 : index
    %c3_73 = arith.constant 3 : index
    %150 = memref.load %arg4[%c3_72, %c3_73] : memref<4x4xf32, #tpu.memory_space<smem>>
    %151 = vector.broadcast %150 : f32 to vector<1x128xf32>
    %152 = arith.mulf %81, %151 : vector<1x128xf32>
    %153 = arith.addf %149, %152 : vector<1x128xf32>
    %c3_74 = arith.constant 3 : index
    %154 = memref.load %arg5[%c3_74] : memref<4xf32, #tpu.memory_space<smem>>
    %cst_75 = arith.constant 2.000000e+00 : f32
    %155 = arith.mulf %cst_75, %154 : f32
    %156 = vector.broadcast %155 : f32 to vector<1x128xf32>
    %157 = arith.addf %153, %156 : vector<1x128xf32>
    %158 = tpu.concatenate %100, %119, %138, %157 in 0 : vector<1x128xf32>, vector<1x128xf32>, vector<1x128xf32>, vector<1x128xf32> -> vector<4x128xf32>
    %c0_76 = arith.constant 0 : index
    %c0_77 = arith.constant 0 : index
    %159 = vector.load %arg6[%c0_76, %c0_77] : memref<4x128xf32, #tpu.memory_space<vmem>>, vector<4x128xf32>
    tpu.vector_store %arg6[%c0_76, %c0_77], %158 {strides = array<i32>} : memref<4x128xf32, #tpu.memory_space<vmem>>, vector<4x128xf32>,
    %160 = arith.addf %1, %3 : vector<2x128xf32>
    %161 = arith.addf %160, %5 : vector<2x128xf32>
    %162 = vector.extract_strided_slice %161 {offsets = [0, 0], sizes = [1, 128], strides = [1, 1]} : vector<2x128xf32> to vector<1x128xf32>
    %cst_78 = arith.constant 0.000000e+00 : f32
    %163 = vector.broadcast %cst_78 : f32 to vector<1x128xf32>
    %164 = arith.cmpf ogt, %162, %163 : vector<1x128xf32>
    %165 = vector.extract_strided_slice %161 {offsets = [1, 0], sizes = [1, 128], strides = [1, 1]} : vector<2x128xf32> to vector<1x128xf32>
    %cst_79 = arith.constant 0.000000e+00 : f32
    %166 = vector.broadcast %cst_79 : f32 to vector<1x128xf32>
    %167 = arith.cmpf ogt, %165, %166 : vector<1x128xf32>
    %168 = arith.andi %164, %167 : vector<1x128xi1>
    %169 = arith.extui %168 : vector<1x128xi1> to vector<1x128xi32>
    %170 = arith.sitofp %169 : vector<1x128xi32> to vector<1x128xf32>
    %c0_80 = arith.constant 0 : index
    %c0_81 = arith.constant 0 : index
    %171 = vector.load %arg7[%c0_80, %c0_81] : memref<1x128xf32, #tpu.memory_space<vmem>>, vector<1x128xf32>
    tpu.vector_store %arg7[%c0_80, %c0_81], %170 {strides = array<i32>} : memref<1x128xf32, #tpu.memory_space<vmem>>, vector<1x128xf32>,
    return
  }
  func.func @transform_0(%arg0: i32) -> (i32, i32, i32) {
    %c0_i32 = arith.constant 0 : i32
    %c0_i32_0 = arith.constant 0 : i32
    %c0_i32_1 = arith.constant 0 : i32
    return %c0_i32, %c0_i32_0, %arg0 : i32, i32, i32
  }
  func.func @transform_1(%arg0: i32) -> (i32, i32) {
    %c0_i32 = arith.constant 0 : i32
    %c0_i32_0 = arith.constant 0 : i32
    %c0_i32_1 = arith.constant 0 : i32
    return %c0_i32, %c0_i32_0 : i32, i32
  }
  func.func @transform_2(%arg0: i32) -> i32 {
    %c0_i32 = arith.constant 0 : i32
    %c0_i32_0 = arith.constant 0 : i32
    return %c0_i32 : i32
  }
  func.func @transform_3(%arg0: i32) -> (i32, i32) {
    %c0_i32 = arith.constant 0 : i32
    %c0_i32_0 = arith.constant 0 : i32
    %c0_i32_1 = arith.constant 0 : i32
    return %c0_i32, %c0_i32_0 : i32, i32
  }
  func.func @transform_4(%arg0: i32) -> i32 {
    %c0_i32 = arith.constant 0 : i32
    %c0_i32_0 = arith.constant 0 : i32
    return %c0_i32 : i32
  }
  func.func @transform_5(%arg0: i32) -> (i32, i32) {
    %c0_i32 = arith.constant 0 : i32
    %c0_i32_0 = arith.constant 0 : i32
    return %c0_i32, %arg0 : i32, i32
  }
  func.func @transform_6(%arg0: i32) -> (i32, i32) {
    %c0_i32 = arith.constant 0 : i32
    %c0_i32_0 = arith.constant 0 : i32
    return %c0_i32, %arg0 : i32, i32
  }
}

</mosaic_0001>

<bundles_post_ra>
// kernel: tpu_custom_call.1
= control target key start
LH: loop header
LB: loop body
LE: loop exit
PB: predicated region body
PF: predicated region fallthrough
CT: control target
= control target key end

     0   :  { %12 = vsyncpa [#allocation3], 0  ;;  %s704_s0 = inlined_call_operand.hbm [shape: f32[3,2,128], index: 0, kind: input, shape index: {}]   ;;  %s705_s1 = inlined_call_operand.hbm [shape: f32[3,4], index: 1, kind: input, shape index: {}]   ;;  %s706_s2 = inlined_call_operand.vmem [shape: f32[4], index: 2, kind: input, shape index: {}]   ;;  %s707_s3 = inlined_call_operand.vmem [shape: f32[4,4], index: 3, kind: input, shape index: {}]   ;;  %s708_s4 = inlined_call_operand.vmem [shape: f32[4], index: 4, kind: input, shape index: {}]   ;;  %s709_s5 = inlined_call_operand.hbm [shape: f32[4,128], index: 5, kind: output, shape index: {0}]   ;;  %s710_s6 = inlined_call_operand.hbm [shape: f32[1,128], index: 6, kind: output, shape index: {1}]  }
   0x1   :  { %13 = vsyncpa [#allocation5], 0 }
   0x2   :  { %14 = vsyncpa [#allocation6], 0 }
   0x3   :  { %15 = vsyncpa [#allocation10], 0 }
   0x4   :  { %16 = vsyncpa [#allocation4], 0  ;;  %s54_s23 = sshll.u32 %s707_s3, 4  ;;  %s55_s23 = int_to_ptr.vmem [resolvable:$true] %s54_s23 }
   0x5   :  { %17 = vsyncpa [#allocation14], 0  ;;  %s343_s24 = scalar_lea.vmem %s55_s23, 64  ;;  %p348_p1 = scmp.lt.s32.totalorder %s55_s23, %s55_s23 }
   0x6   :  { %p344_p0 = scmp.ne.s32.totalorder %s55_s23, %s343_s24  ;;  %p349_p2 = scmp.lt.s32.totalorder %s343_s24, %s343_s24 }
   0x8   :  { %p350_p3 = por %p349_p2, %p348_p1 }
   0xa   :  { %p351_p4 = pnand %p350_p3, %p344_p0 }
   0xc   :  { %354 = shalt.err (!%p351_p4)
}
   0xd   :  { %s467_s25 = smov [#allocation9]   ;;  %s468_s26 = smov [#allocation2]  }
   0xe   :  { %57 = dma.vmem_to_smem %s55_s23, 64, %s467_s25, [#allocation10]  }
   0xf   :  { %s23_s27 = sshll.u32 %s468_s26, 4  ;;  %s355_s30 = scalar_lea.hbm %s704_s0, 96  ;;  %s24_s27 = int_to_ptr.vmem [resolvable:$true] %s23_s27 }
  0x10   :  { %p356_p5 = scmp.ne.s32.totalorder %s704_s0, %s355_s30  ;;  %p359_p6 = scmp.lt.u32.totalorder %s355_s30, %s704_s0 }
  0x12   :  { %p361_p7 = pnand %p359_p6, %p356_p5 }
  0x14   :  { %364 = shalt.err (!%p361_p7)
}
  0x15   :  { %s365_s10 = scalar_lea.vmem %s24_s27, 96  ;;  %p370_p9 = scmp.lt.s32.totalorder %s24_s27, %s24_s27 }
  0x16   :  { %p366_p8 = scmp.ne.s32.totalorder %s24_s27, %s365_s10  ;;  %p371_p10 = scmp.lt.s32.totalorder %s365_s10, %s365_s10 }
  0x18   :  { %p372_p11 = por %p371_p10, %p370_p9 }
  0x1a   :  { %p373_p12 = pnand %p372_p11, %p366_p8 }
  0x1c   :  { %376 = shalt.err (!%p373_p12)
}
  0x1d   :  { %s469_s11 = smov 32   ;;  %s470_s12 = smov 2  }
  0x1e   :  { %29 = dma.hbm_to_vmem [thread:$0]  %s704_s0, 96, %s24_s27, [#allocation3], %s469_s11, %s469_s11, %s470_s12  }
  0x1f   :  { %s44_s17 = sshll.u32 %s706_s2, 4  ;;  %s377_s20 = scalar_lea.hbm %s705_s1, 64  ;;  %s45_s17 = int_to_ptr.vmem [resolvable:$true] %s44_s17 }
  0x20   :  { %p378_p13 = scmp.ne.s32.totalorder %s705_s1, %s377_s20  ;;  %p381_p0 = scmp.lt.u32.totalorder %s377_s20, %s705_s1 }
  0x22   :  { %p383_p1 = pnand %p381_p0, %p378_p13 }
  0x24   :  { %386 = shalt.err (!%p383_p1)
}
  0x25   :  { %s471_s25 = smov [#allocation7]   ;;  %s387_s2 = scalar_lea.vmem %s45_s17, 16 }
  0x26   :  { %37 = dma.hbm_to_smem %s705_s1, 64, %s471_s25, [#allocation5]  }
  0x27   :  { %p388_p2 = scmp.ne.s32.totalorder %s45_s17, %s387_s2  ;;  %p392_p3 = scmp.lt.s32.totalorder %s45_s17, %s45_s17 }
  0x28   :  { %p393_p4 = scmp.lt.s32.totalorder %s387_s2, %s387_s2 }
  0x2a   :  { %p394_p5 = por %p393_p4, %p392_p3 }
  0x2c   :  { %p395_p6 = pnand %p394_p5, %p388_p2 }
  0x2e   :  { %398 = shalt.err (!%p395_p6)
}
  0x2f   :  { %s472_s27 = smov [#allocation8]   ;;  %s64_s30 = sshll.u32 %s708_s4, 4  ;;  %s65_s30 = int_to_ptr.vmem [resolvable:$true] %s64_s30 }
  0x30   :  { %47 = dma.vmem_to_smem %s45_s17, 16, %s472_s27, [#allocation6]  }
  0x31   :  { %s399_s7 = scalar_lea.vmem %s65_s30, 16  ;;  %p404_p8 = scmp.lt.s32.totalorder %s65_s30, %s65_s30 }
  0x32   :  { %p400_p7 = scmp.ne.s32.totalorder %s65_s30, %s399_s7  ;;  %p405_p9 = scmp.lt.s32.totalorder %s399_s7, %s399_s7 }
  0x34   :  { %p406_p10 = por %p405_p9, %p404_p8 }
  0x36   :  { %p407_p11 = pnand %p406_p10, %p400_p7 }
  0x38   :  { %410 = shalt.err (!%p407_p11)
}
  0x39   :  { %s473_s1 = smov [#allocation11]  }
  0x3a   :  { %67 = dma.vmem_to_smem %s65_s30, 16, %s473_s1, [#allocation10]  }
  0x3b   :  { %455 = dma.done.wait [#allocation3], 96  }
  0x3c   :  { %456 = vsyncadd [#allocation3], 4294967200 }
  0x3d   :  { %457 = dma.done.wait [#allocation5], 64  }
  0x3e   :  { %458 = vsyncadd [#allocation5], 4294967232 }
  0x3f   :  { %459 = dma.done.wait [#allocation6], 16  }
  0x40   :  { %460 = vsyncadd [#allocation6], 4294967280 }
  0x41   :  { %461 = dma.done.wait [#allocation10], 80  }
  0x42   :  { %462 = vsyncadd [#allocation10], 4294967216 }
  0x43   :  { %83 = sfence }
  0x44   :  { %v546_v0 = vld [vmem:[#allocation2] sm:$0x3]  ;;  %v548_v1 = vld [vmem:[#allocation2 + $0x2] sm:$0x3]  ;;  %s89_s4 = sld [smem:[#allocation7]]  ;;  %s301_s10 = sld [smem:[#allocation7 + $0x1]] }
  0x45   :  { %s299_s3 = sld [smem:[#allocation7 + $0x80]]  ;;  %v257_v2 = vadd.f32 %v548_v1, %v546_v0  ;;  %v552_v3 = vld [vmem:[#allocation2 + $0x4] sm:$0x3]  ;;  %s302_s11 = sld [smem:[#allocation7 + $0x81]]  ;;  %v474_v5 = vmov 0   ;;  %vm250_vm3 = vcmask 1040384  }
  0x46   :  { %s300_s8 = sld [smem:[#allocation7 + $0x100]]  ;;  %s559_s12 = sld [smem:[#allocation7 + $0x101]] }
  0x47   :  { %s554_s9 = sld [smem:[#allocation8]]  ;;  %v557_v4 = vadd.f32 %v257_v2, %v552_v3  ;;  %s561_s13 = sld [smem:[#allocation8 + $0x1]] }
  0x48   :  { %s563_s14 = sld [smem:[#allocation7 + $0x2]]  ;;  %s576_s18 = sld [smem:[#allocation7 + $0x3]] }
  0x49   :  { %s565_s15 = sld [smem:[#allocation7 + $0x82]]  ;;  %vm259_vm0 = vcmp.gt.f32.partialorder %v557_v4, 0.0  ;;  %s578_s19 = sld [smem:[#allocation7 + $0x83]] }
  0x4a   :  { %s568_s16 = sld [smem:[#allocation7 + $0x102]]  ;;  %v574_v6 = vsel %vm259_vm0, 1, %v474_v5  ;;  %v90_v7 = vstv %s89_s4  ;;  %s582_s20 = sld [smem:[#allocation7 + $0x103]]  ;;  %v109_v13 = vstv %s301_s10 }
  0x4b   :  { %s570_s17 = sld [smem:[#allocation8 + $0x2]]  ;;  %v93_v8 = vstv %s299_s3  ;;  %v91_v9 = vmul.f32 %v90_v7, %v546_v0  ;;  %s584_s21 = sld [smem:[#allocation8 + $0x3]]  ;;  %v112_v14 = vstv %s302_s11  ;;  %v261_v15 = vrot.slane %v574_v6, 1 }
  0x4c   :  { %v94_v10 = vmul.f32 %v93_v8, %v548_v1  ;;  %v97_v11 = vstv %s300_s8  ;;  %s587_s22 = sld [smem:[#allocation9]]  ;;  %v110_v17 = vmul.f32 %v109_v13, %v546_v0  ;;  %v113_v18 = vmul.f32 %v112_v14, %v548_v1  ;;  %s605_s26 = sld [smem:[#allocation9 + $0x1]] }
  0x4d   :  { %v98_v12 = vmul.f32 %v97_v11, %v552_v3  ;;  %s589_s23 = sld [smem:[#allocation9 + $0x80]]  ;;  %v116_v19 = vstv %s559_s12  ;;  %v101_v20 = vstv %s554_s9  ;;  %s609_s2 = sld [smem:[#allocation9 + $0x81]]  ;;  %v120_v28 = vstv %s561_s13 }
  0x4e   :  { %v95_v16 = vadd.f32 %v94_v10, %v91_v9  ;;  %s595_s24 = sld [smem:[#allocation9 + $0x100]]  ;;  %v117_v21 = vmul.f32 %v116_v19, %v552_v3  ;;  %v128_v22 = vstv %s563_s14  ;;  %v114_v25 = vadd.f32 %v113_v18, %v110_v17  ;;  %s611_s27 = sld [smem:[#allocation9 + $0x101]] }
  0x4f   :  { %s597_s25 = sld [smem:[#allocation9 + $0x180]]  ;;  %v131_v23 = vstv %s565_s15  ;;  %v129_v26 = vmul.f32 %v128_v22, %v546_v0  ;;  %v147_v30 = vstv %s576_s18  ;;  %v150_v31 = vstv %s578_s19  ;;  %s617_s28 = sld [smem:[#allocation9 + $0x181]] }
  0x50   :  { %s603_s0 = sld [smem:[#allocation11]]  ;;  %v99_v24 = vadd.f32 %v98_v12, %v95_v16  ;;  %v132_v27 = vmul.f32 %v131_v23, %v548_v1  ;;  %v135_v29 = vstv %s568_s16  ;;  %s619_s29 = sld [smem:[#allocation11 + $0x1]]  ;;  %v118_v33 = vadd.f32 %v117_v21, %v114_v25 }
  0x51   :  { %v136_v35 = vmul.f32 %v135_v29, %v552_v3  ;;  %s622_s30 = sld [smem:[#allocation9 + $0x2]]  ;;  %v139_v36 = vstv %s570_s17  ;;  %v148_v37 = vmul.f32 %v147_v30, %v546_v0  ;;  %v151_v38 = vmul.f32 %v150_v31, %v548_v1  ;;  %s639_s8 = sld [smem:[#allocation9 + $0x3]] }
  0x52   :  { %v102_v32 = vadd.f32 %v101_v20, %v99_v24  ;;  %v133_v34 = vadd.f32 %v132_v27, %v129_v26  ;;  %v154_v39 = vstv %s582_s20  ;;  %s628_s7 = sld [smem:[#allocation9 + $0x82]]  ;;  %v121_v41 = vadd.f32 %v120_v28, %v118_v33  ;;  %s653_s10 = sld [smem:[#allocation9 + $0x83]] }
  0x53   :  { %s630_s1 = sld [smem:[#allocation9 + $0x102]]  ;;  %v155_v43 = vmul.f32 %v154_v39, %v552_v3  ;;  %v152_v44 = vadd.f32 %v151_v38, %v148_v37  ;;  %v158_v45 = vstv %s584_s21  ;;  %v166_v46 = vstv %s587_s22  ;;  %s655_s11 = sld [smem:[#allocation9 + $0x103]] }
  0x54   :  { %v103_v40 = vmax.f32 %v102_v32, 0.0  ;;  %v137_v42 = vadd.f32 %v136_v35, %v133_v34  ;;  %s633_s4 = sld [smem:[#allocation9 + $0x182]]  ;;  %v169_v47 = vstv %s589_s23  ;;  %v122_v49 = vmax.f32 %v121_v41, 0.0  ;;  %s661_s13 = sld [smem:[#allocation9 + $0x183]] }
  0x55   :  { %v173_v51 = vstv %s595_s24  ;;  %s642_s9 = sld [smem:[#allocation11 + $0x2]]  ;;  %vm644_vm1 = vcmp.ne.s32.totalorder %v261_v15, 0  ;;  %v156_v53 = vadd.f32 %v155_v43, %v152_v44  ;;  %v177_v54 = vstv %s597_s25  ;;  %s665_s14 = sld [smem:[#allocation11 + $0x3]] }
  0x56   :  { %s181_s3 = smul.f32 2.0, %s603_s0  ;;  %v105_v48 = vrot.slane %v103_v40, 1  ;;  %v140_v50 = vadd.f32 %v139_v36, %v137_v42  ;;  %v185_v56 = vstv %s605_s26  ;;  %v124_v58 = vrot.slane %v122_v49, 1  ;;  %s475_s16 = smov [#allocation13]   ;;  %vm263_vm2 = vmand %vm259_vm0, %vm644_vm1 }
  0x57   :  { %v188_v60 = vstv %s609_s2  ;;  %v159_v61 = vadd.f32 %v158_v45, %v156_v53  ;;  %v192_v62 = vstv %s611_s27  ;;  %v196_v63 = vstv %s617_s28  ;;  %s200_s12 = smul.f32 2.0, %s619_s29  ;;  %s283_s17 = sshll.u32 %s475_s16, 4  ;;  %s284_s17 = int_to_ptr.vmem [resolvable:$true] %s283_s17 }
  0x58   :  { %v649_v55 = vstv %s181_s3  ;;  %v107_v57 = vadd.f32 %v105_v48, %v103_v40  ;;  %v141_v59 = vmax.f32 %v140_v50, 0.0  ;;  %v204_v0 = vstv %s622_s30  ;;  %s411_s19 = scalar_lea.vmem %s284_s17, 16  ;;  %s415_s20 = scalar_lea.vmem %s284_s17, 32 }
  0x59   :  { %v126_v1 = vadd.f32 %v124_v58, %v122_v49  ;;  %v160_v6 = vmax.f32 %v159_v61, 0.0  ;;  %v207_v8 = vstv %s628_s7  ;;  %v211_v9 = vstv %s630_s1  ;;  %p412_p12 = scmp.ne.s32.totalorder %s284_s17, %s411_s19  ;;  %p416_p13 = scmp.lt.s32.totalorder %s284_s17, %s284_s17 }
  0x5a   :  { %v143_v2 = vrot.slane %v141_v59, 1  ;;  %v167_v3 = vmul.f32 %v166_v46, %v107_v57  ;;  %v186_v5 = vmul.f32 %v185_v56, %v107_v57  ;;  %v205_v7 = vmul.f32 %v204_v0, %v107_v57  ;;  %p417_p0 = scmp.lt.s32.totalorder %s415_s20, %s411_s19 }
  0x5b   :  { %v170_v11 = vmul.f32 %v169_v47, %v126_v1  ;;  %v189_v12 = vmul.f32 %v188_v60, %v126_v1  ;;  %v208_v13 = vmul.f32 %v207_v8, %v126_v1  ;;  %v162_v14 = vrot.slane %v160_v6, 1  ;;  %s219_s15 = smul.f32 2.0, %s642_s9 }
  0x5c   :  { %v145_v10 = vadd.f32 %v143_v2, %v141_v59  ;;  %v201_v15 = vstv %s200_s12  ;;  %v215_v16 = vstv %s633_s4  ;;  %v223_v17 = vstv %s639_s8  ;;  %s238_s18 = smul.f32 2.0, %s665_s14  ;;  %p418_p1 = por %p417_p0, %p416_p13 }
  0x5d   :  { %v171_v18 = vadd.f32 %v170_v11, %v167_v3  ;;  %v190_v20 = vadd.f32 %v189_v12, %v186_v5  ;;  %v164_v22 = vadd.f32 %v162_v14, %v160_v6  ;;  %v209_v23 = vadd.f32 %v208_v13, %v205_v7 }
  0x5e   :  { %v174_v19 = vmul.f32 %v173_v51, %v145_v10  ;;  %v193_v21 = vmul.f32 %v192_v62, %v145_v10  ;;  %v212_v24 = vmul.f32 %v211_v9, %v145_v10  ;;  %v224_v25 = vmul.f32 %v223_v17, %v107_v57  ;;  %p419_p2 = pnand %p418_p1, %p412_p12 }
  0x5f   :  { %v226_v28 = vstv %s653_s10  ;;  %v230_v29 = vstv %s655_s11  ;;  %v178_v30 = vmul.f32 %v177_v54, %v164_v22  ;;  %v197_v31 = vmul.f32 %v196_v63, %v164_v22 }
  0x60   :  { %v175_v26 = vadd.f32 %v174_v19, %v171_v18  ;;  %v194_v27 = vadd.f32 %v193_v21, %v190_v20  ;;  %v213_v32 = vadd.f32 %v212_v24, %v209_v23  ;;  %v216_v33 = vmul.f32 %v215_v16, %v164_v22 }
  0x61   :  { %v220_v34 = vstv %s219_s15  ;;  %v227_v35 = vmul.f32 %v226_v28, %v126_v1  ;;  %v231_v36 = vmul.f32 %v230_v29, %v145_v10  ;;  %v234_v37 = vstv %s661_s13 }
  0x62   :  { %v179_v38 = vadd.f32 %v178_v30, %v175_v26  ;;  %v198_v39 = vadd.f32 %v197_v31, %v194_v27  ;;  %v217_v40 = vadd.f32 %v216_v33, %v213_v32  ;;  %v235_v42 = vmul.f32 %v234_v37, %v164_v22 }
  0x63   :  { %v228_v41 = vadd.f32 %v227_v35, %v224_v25  ;;  %v476_v43 = vmov 0.0  }
  0x64   :  { %v331_v44 = vsel %vm263_vm2, 1.0, %v476_v43  ;;  %v183_v45 = vadd.f32 %v649_v55, %v179_v38  ;;  %v202_v46 = vadd.f32 %v201_v15, %v198_v39  ;;  %v221_v47 = vadd.f32 %v220_v34, %v217_v40 }
  0x65   :  { %266 = vst [vmem:[#allocation13] sm:$0x1] %v331_v44  ;;  %v232_v4 = vadd.f32 %v231_v36, %v228_v41 }
  0x66   :  { %422 = shalt.err (!%p419_p2)
}
  0x67   :  { %s423_s23 = scalar_lea.hbm %s710_s6, 16 }
  0x68   :  { %p424_p3 = scmp.ne.s32.totalorder %s710_s6, %s423_s23  ;;  %p427_p4 = scmp.lt.u32.totalorder %s423_s23, %s710_s6 }
  0x6a   :  { %p429_p5 = pnand %p427_p4, %p424_p3 }
  0x6c   :  { %432 = shalt.err (!%p429_p5)
}
  0x6d   :  { %286 = dma.vmem_to_hbm [thread:$0]  %s284_s17, 16, %s710_s6, [#allocation14]   ;;  %v239_v48 = vstv %s238_s18  ;;  %v242_v49 = vrot.slane %v202_v46, 7  ;;  %v245_v50 = vrot.slane %v221_v47, 6  ;;  %v236_v51 = vadd.f32 %v235_v42, %v232_v4 }
  0x6e   :  { %vm252_vm4 = vcmask 1041408   ;;  %s477_s28 = smov [#allocation12]   ;;  %vm254_vm5 = vcmask 1042432  }
  0x6f   :  { %v251_v52 = vsel %vm250_vm3, %v183_v45, %v242_v49  ;;  %v240_v53 = vadd.f32 %v239_v48, %v236_v51  ;;  %s273_s29 = sshll.u32 %s477_s28, 4  ;;  %s274_s29 = int_to_ptr.vmem [resolvable:$true] %s273_s29 }
  0x70   :  { %v253_v54 = vsel %vm252_vm4, %v251_v52, %v245_v50  ;;  %s433_s30 = scalar_lea.vmem %s274_s29, 64  ;;  %p438_p7 = scmp.lt.s32.totalorder %s274_s29, %s274_s29 }
  0x71   :  { %v248_v55 = vrot.slane %v240_v53, 5  ;;  %p434_p6 = scmp.ne.s32.totalorder %s274_s29, %s433_s30  ;;  %p439_p8 = scmp.lt.s32.totalorder %s433_s30, %s433_s30 }
  0x73   :  { %v255_v56 = vsel %vm254_vm5, %v253_v54, %v248_v55  ;;  %p440_p9 = por %p439_p8, %p438_p7 }
  0x74   :  { %256 = vst [vmem:[#allocation12] sm:$0xf] %v255_v56 }
  0x75   :  { %p441_p10 = pnand %p440_p9, %p434_p6 }
  0x77   :  { %444 = shalt.err (!%p441_p10)
}
  0x78   :  { %s445_s1 = scalar_lea.hbm %s709_s5, 64 }
  0x79   :  { %p446_p11 = scmp.ne.s32.totalorder %s709_s5, %s445_s1  ;;  %p449_p12 = scmp.lt.u32.totalorder %s445_s1, %s709_s5 }
  0x7b   :  { %p451_p13 = pnand %p449_p12, %p446_p11 }
  0x7d   :  { %454 = shalt.err (!%p451_p13)
}
  0x7e   :  { %276 = dma.vmem_to_hbm [thread:$0]  %s274_s29, 64, %s709_s5, [#allocation4]  }
  0x7f   :  { %463 = dma.done.wait [#allocation4], 64  }
  0x80   :  { %464 = vsyncadd [#allocation4], 4294967232 }
  0x81   :  { %465 = dma.done.wait [#allocation14], 16  }
  0x82   :  { %466 = vsyncadd [#allocation14], 4294967280 }
  0x83   :  { %293 = vsyncpa [#allocation3], 1 }
  0x84   :  { %294 = vsyncpa [#allocation4], 1 }
  0x85   :  { %295 = vsyncpa [#allocation14], 1 }
  0x86   :  { %296 = vsyncpa [#allocation5], 1 }
  0x87   :  { %297 = vsyncpa [#allocation6], 1 }
  0x88   :  { %298 = vsyncpa [#allocation10], 1 }

</bundles_post_ra>
